<compile_context>
chip_gen: v7x
topology: tpu7x:2x2x1
jax: 0.10.0
libtpu: 0.0.40
codegen_flags: <defaults>
</compile_context>

<pallas_src>
import functools

import jax
import jax.numpy as jnp
from jax.experimental import pallas as pl
from jax.experimental.pallas import tpu as pltpu


def _round_up(n, m):
    return ((n + m - 1) // m) * m


def _reward_kernel(params_ref, x_ref, o_ref, *, input_dim, hidden_dim):
    D, H = input_dim, hidden_dim
    x = x_ref[...]                                     # [TB, D] f32

    # Static carve-outs from the single packed parameter buffer (one DMA).
    w1 = params_ref[0:D, :]                            # [D, H]
    w2 = params_ref[D:D + H, :]                        # [H, H]
    b1 = params_ref[D + H, :]                          # [H]
    b2 = params_ref[D + H + 1, :]                      # [H]
    w3 = params_ref[D + H + 2, :]                      # [H]   (w3 column stored as a row)
    b3 = params_ref[D + H + 3:D + H + 4, 0:1]          # [1, 1]

    hp = jax.lax.Precision.HIGHEST
    h1 = jnp.maximum(
        jnp.dot(x, w1, preferred_element_type=jnp.float32, precision=hp) + b1, 0.0)
    h2 = jnp.maximum(
        jnp.dot(h1, w2, preferred_element_type=jnp.float32, precision=hp) + b2, 0.0)

    # Final H -> 1 projection: VPU multiply + cross-lane reduce (XLU), not an
    # N=1 MXU matmul.  Emit the result as a lane-dense [1, TB] row.
    red = jnp.sum(h2 * w3, axis=-1)                    # [TB]
    o_ref[...] = (red.reshape(1, -1) + b3).astype(o_ref.dtype)   # [1, TB]


@jax.jit
def reward_forward(x, params):
    """RewardModel forward pass: ReLU MLP D -> H -> H -> 1.

    x:      [B, D] float32
    params: [R, H] float32 packed parameter buffer (see pack_params)
    returns [B, 1] float32
    """
    B, D = x.shape
    R, H = params.shape

    # Batch tile: multiple of 8, capped at 512; small batches -> single grid step.
    TB = min(512, _round_up(B, 8))
    B_pad = _round_up(B, TB)
    num_tiles = B_pad // TB
    if B_pad != B:
        x = jnp.pad(x, ((0, B_pad - B), (0, 0)))

    kernel = functools.partial(_reward_kernel, input_dim=D, hidden_dim=H)

    out_rows = pl.pallas_call(
        kernel,
        out_shape=jax.ShapeDtypeStruct((num_tiles, TB), jnp.float32),
        grid=(num_tiles,),
        in_specs=[
            # One coalesced DMA for all weights/biases; constant block index +
            # single-buffering keeps exactly one VMEM copy resident across tiles.
            pl.BlockSpec((R, H), lambda i: (0, 0), pipeline_mode=pl.Buffered(1)),
            pl.BlockSpec((TB, D), lambda i: (i, 0)),
        ],
        # Lane-dense output row per grid step.
        out_specs=pl.BlockSpec((1, TB), lambda i: (i, 0)),
        compiler_params=pltpu.CompilerParams(
            dimension_semantics=("parallel",)),
    )(params, x)

    return out_rows.reshape(B_pad, 1)[:B]


def init_params(key, input_dim, hidden_dim):
    """torch.nn.Linear-style init: U(-1/sqrt(fan_in), +1/sqrt(fan_in))."""
    def linear(k, fan_in, fan_out):
        kw, kb = jax.random.split(k)
        bound = 1.0 / jnp.sqrt(jnp.float32(fan_in))
        w = jax.random.uniform(kw, (fan_in, fan_out), jnp.float32, -bound, bound)
        b = jax.random.uniform(kb, (fan_out,), jnp.float32, -bound, bound)
        return w, b

    k1, k2, k3 = jax.random.split(key, 3)
    w1, b1 = linear(k1, input_dim, hidden_dim)   # [D, H], [H]
    w2, b2 = linear(k2, hidden_dim, hidden_dim)  # [H, H], [H]
    w3, b3 = linear(k3, hidden_dim, 1)           # [H, 1], [1]
    return w1, b1, w2, b2, w3, b3


def pack_params(w1, b1, w2, b2, w3, b3):
    """Pack all layer weights/biases into one [R, H] f32 buffer.

    Row layout:  [0, D)       -> w1        [D, H]
                 [D, D+H)     -> w2        [H, H]
                 D+H          -> b1        [H]
                 D+H+1        -> b2        [H]
                 D+H+2        -> w3 row    [H]   (== w3[:, 0])
                 D+H+3, col 0 -> b3 scalar
    R is rounded up to a multiple of 8 (sublane alignment); pad rows are zero.
    """
    D, H = w1.shape
    R = _round_up(D + H + 4, 8)
    buf = jnp.zeros((R, H), jnp.float32)
    buf = buf.at[0:D, :].set(w1)
    buf = buf.at[D:D + H, :].set(w2)
    buf = buf.at[D + H, :].set(b1)
    buf = buf.at[D + H + 1, :].set(b2)
    buf = buf.at[D + H + 2, :].set(w3[:, 0])
    buf = buf.at[D + H + 3, 0].set(b3[0])
    return buf


def reference_forward(x, w1, b1, w2, b2, w3, b3):
    """Pure-JAX RewardModel forward, matching the kernel's arithmetic:
    HIGHEST-precision f32 matmuls for layers 1-2 and a VPU-style
    multiply+reduce for the 1-wide final projection."""
    hp = jax.lax.Precision.HIGHEST
    h1 = jnp.maximum(jnp.dot(x, w1, precision=hp) + b1, 0.0)
    h2 = jnp.maximum(jnp.dot(h1, w2, precision=hp) + b2, 0.0)
    return jnp.sum(h2 * w3[:, 0], axis=-1, keepdims=True) + b3


if __name__ == "__main__":
    key = jax.random.PRNGKey(0)
    kx, kp = jax.random.split(key)

    B, D, H = 16, 16, 128   # batch, input_dim, hidden_dim (module default 128)
    x = jax.random.normal(kx, (B, D), jnp.float32)
    raw = init_params(kp, D, H)
    params = pack_params(*raw)

    out = reward_forward(x, params)
    out = jax.block_until_ready(out)

    ref = reference_forward(x, *raw)
    assert out.shape == (B, 1)
    assert jnp.allclose(out, ref, atol=1e-4, rtol=1e-4), (out, ref)

    print("KERNEL_OK")
</pallas_src>

<mosaic_0001>
module attributes {stable_mosaic.version = 11 : i64} {
  func.func @_reward_kernel(%arg0: i32, %arg1: memref<152x128xf32, #tpu.memory_space<vmem>>, %arg2: memref<16x16xf32, #tpu.memory_space<vmem>>, %arg3: memref<1x16xf32, #tpu.memory_space<vmem>>) attributes {dimension_semantics = [#tpu.dimension_semantics<parallel>], iteration_bounds = array<i64: 1>, scalar_prefetch = 0 : i64, scratch_operands = 0 : i64, tpu.core_type = #tpu.core_type<tc>, window_params = [{pipeline_mode = #tpu.pipeline_mode<synchronous>, transform_indices = @transform_0, window_bounds = array<i64: 152, 128>}, {transform_indices = @transform_1, window_bounds = array<i64: 16, 16>}, {transform_indices = @transform_2, window_bounds = array<i64: 1, 16>}]} {
    %c0 = arith.constant 0 : index
    %c0_0 = arith.constant 0 : index
    %0 = vector.load %arg2[%c0, %c0_0] : memref<16x16xf32, #tpu.memory_space<vmem>>, vector<16x16xf32>
    %c0_1 = arith.constant 0 : index
    %c0_2 = arith.constant 0 : index
    %1 = vector.load %arg1[%c0_1, %c0_2] : memref<152x128xf32, #tpu.memory_space<vmem>>, vector<16x128xf32>
    %c16 = arith.constant 16 : index
    %c0_3 = arith.constant 0 : index
    %2 = vector.load %arg1[%c16, %c0_3] : memref<152x128xf32, #tpu.memory_space<vmem>>, vector<128x128xf32>
    %c144 = arith.constant 144 : index
    %c0_4 = arith.constant 0 : index
    %3 = vector.load %arg1[%c144, %c0_4] : memref<152x128xf32, #tpu.memory_space<vmem>>, vector<1x128xf32>
    %4 = vector.shape_cast %3 : vector<1x128xf32> to vector<128xf32>
    %c145 = arith.constant 145 : index
    %c0_5 = arith.constant 0 : index
    %5 = vector.load %arg1[%c145, %c0_5] : memref<152x128xf32, #tpu.memory_space<vmem>>, vector<1x128xf32>
    %6 = vector.shape_cast %5 : vector<1x128xf32> to vector<128xf32>
    %c146 = arith.constant 146 : index
    %c0_6 = arith.constant 0 : index
    %7 = vector.load %arg1[%c146, %c0_6] : memref<152x128xf32, #tpu.memory_space<vmem>>, vector<1x128xf32>
    %8 = vector.shape_cast %7 : vector<1x128xf32> to vector<128xf32>
    %c147 = arith.constant 147 : index
    %c0_7 = arith.constant 0 : index
    %9 = vector.load %arg1[%c147, %c0_7] : memref<152x128xf32, #tpu.memory_space<vmem>>, vector<1x1xf32>
    %cst = arith.constant dense<0.000000e+00> : vector<16x128xf32>
    %10 = tpu.matmul %0, %1, %cst {dimension_numbers = #tpu.dot_dimension_numbers<[1], [0], [0], [1], [0, 0, 1, 1], [], []>, precision = #tpu.contract_precision<fp32>} : vector<16x16xf32>, vector<16x128xf32>, vector<16x128xf32> -> vector<16x128xf32>
    %11 = vector.shape_cast %4 : vector<128xf32> to vector<1x128xf32>
    %12 = vector.broadcast %11 : vector<1x128xf32> to vector<16x128xf32>
    %13 = arith.addf %10, %12 : vector<16x128xf32>
    %cst_8 = arith.constant 0.000000e+00 : f32
    %14 = vector.broadcast %cst_8 : f32 to vector<16x128xf32>
    %15 = arith.maximumf %13, %14 : vector<16x128xf32>
    %cst_9 = arith.constant dense<0.000000e+00> : vector<16x128xf32>
    %16 = tpu.matmul %15, %2, %cst_9 {dimension_numbers = #tpu.dot_dimension_numbers<[1], [0], [0], [1], [0, 0, 1, 1], [], []>, precision = #tpu.contract_precision<fp32>} : vector<16x128xf32>, vector<128x128xf32>, vector<16x128xf32> -> vector<16x128xf32>
    %17 = vector.shape_cast %6 : vector<128xf32> to vector<1x128xf32>
    %18 = vector.broadcast %17 : vector<1x128xf32> to vector<16x128xf32>
    %19 = arith.addf %16, %18 : vector<16x128xf32>
    %cst_10 = arith.constant 0.000000e+00 : f32
    %20 = vector.broadcast %cst_10 : f32 to vector<16x128xf32>
    %21 = arith.maximumf %19, %20 : vector<16x128xf32>
    %22 = vector.shape_cast %8 : vector<128xf32> to vector<1x128xf32>
    %23 = vector.broadcast %22 : vector<1x128xf32> to vector<16x128xf32>
    %24 = arith.mulf %21, %23 : vector<16x128xf32>
    %cst_11 = arith.constant dense<0.000000e+00> : vector<16xf32>
    %25 = vector.multi_reduction <add>, %24, %cst_11 [1] : vector<16x128xf32> to vector<16xf32>
    %26 = vector.shape_cast %25 : vector<16xf32> to vector<1x16xf32>
    %27 = vector.broadcast %9 : vector<1x1xf32> to vector<1x16xf32>
    %28 = arith.addf %26, %27 : vector<1x16xf32>
    %c0_12 = arith.constant 0 : index
    %c0_13 = arith.constant 0 : index
    %29 = vector.load %arg3[%c0_12, %c0_13] : memref<1x16xf32, #tpu.memory_space<vmem>>, vector<1x16xf32>
    tpu.vector_store %arg3[%c0_12, %c0_13], %28 {strides = array<i32>} : memref<1x16xf32, #tpu.memory_space<vmem>>, vector<1x16xf32>,
    return
  }
  func.func @transform_0(%arg0: i32) -> (i32, i32) {
    %c0_i32 = arith.constant 0 : i32
    %c0_i32_0 = arith.constant 0 : i32
    %c0_i32_1 = arith.constant 0 : i32
    return %c0_i32, %c0_i32_0 : i32, i32
  }
  func.func @transform_1(%arg0: i32) -> (i32, i32) {
    %c0_i32 = arith.constant 0 : i32
    %c0_i32_0 = arith.constant 0 : i32
    return %arg0, %c0_i32 : i32, i32
  }
  func.func @transform_2(%arg0: i32) -> (i32, i32) {
    %c0_i32 = arith.constant 0 : i32
    %c0_i32_0 = arith.constant 0 : i32
    return %arg0, %c0_i32 : i32, i32
  }
}

</mosaic_0001>

<bundles_post_ra>
// kernel: reward_forward.1
= control target key start
LH: loop header
LB: loop body
LE: loop exit
PB: predicated region body
PF: predicated region fallthrough
CT: control target
= control target key end

     0   :  { %7 = vsyncpa [#allocation3], 0  ;;  %s2334_s0 = inlined_call_operand.hbm [shape: f32[152,128], index: 0, kind: input, shape index: {}]   ;;  %s2335_s1 = inlined_call_operand.hbm [shape: f32[16,16], index: 1, kind: input, shape index: {}]   ;;  %s2336_s2 = inlined_call_operand.hbm [shape: f32[1,16], index: 2, kind: output, shape index: {}]  }
   0x1   :  { %8 = vsyncpa [#allocation6], 0 }
   0x2   :  { %9 = vsyncpa [#allocation4], 0  ;;  %s2037_s9 = smov [#allocation2]   ;;  %s1965_s13 = scalar_lea.hbm %s2334_s0, 2432 }
   0x3   :  { %s15_s10 = sshll.u32 %s2037_s9, 4  ;;  %p1966_p0 = scmp.ne.s32.totalorder %s2334_s0, %s1965_s13  ;;  %s16_s10 = int_to_ptr.vmem [resolvable:$true] %s15_s10 }
   0x4   :  { %p1969_p1 = scmp.lt.u32.totalorder %s1965_s13, %s2334_s0 }
   0x6   :  { %p1971_p2 = pnand %p1969_p1, %p1966_p0 }
   0x8   :  { %1974 = shalt.err (!%p1971_p2)
}
   0x9   :  { %s1975_s18 = scalar_lea.vmem %s16_s10, 2432  ;;  %p1980_p4 = scmp.lt.s32.totalorder %s16_s10, %s16_s10 }
   0xa   :  { %p1976_p3 = scmp.ne.s32.totalorder %s16_s10, %s1975_s18  ;;  %p1981_p5 = scmp.lt.s32.totalorder %s1975_s18, %s1975_s18 }
   0xc   :  { %p1982_p6 = por %p1981_p5, %p1980_p4 }
   0xe   :  { %p1983_p7 = pnand %p1982_p6, %p1976_p3 }
  0x10   :  { %1986 = shalt.err (!%p1983_p7)
}
  0x11   :  { %s2038_s19 = smov 128   ;;  %s2039_s20 = smov 8  }
  0x12   :  { %21 = dma.hbm_to_vmem [thread:$0]  %s2334_s0, 2432, %s16_s10, [#allocation3], %s2038_s19, %s2038_s19, %s2039_s20  }
  0x13   :  { %s2040_s23 = smov [#allocation5]   ;;  %s1987_s27 = scalar_lea.hbm %s2335_s1, 256 }
  0x14   :  { %s27_s24 = sshll.u32 %s2040_s23, 4  ;;  %p1988_p8 = scmp.ne.s32.totalorder %s2335_s1, %s1987_s27  ;;  %s28_s24 = int_to_ptr.vmem [resolvable:$true] %s27_s24 }
  0x15   :  { %p1991_p9 = scmp.lt.u32.totalorder %s1987_s27, %s2335_s1 }
  0x17   :  { %p1993_p10 = pnand %p1991_p9, %p1988_p8 }
  0x19   :  { %1996 = shalt.err (!%p1993_p10)
}
  0x1a   :  { %s1997_s4 = scalar_lea.vmem %s28_s24, 256  ;;  %p2002_p12 = scmp.lt.s32.totalorder %s28_s24, %s28_s24 }
  0x1b   :  { %p1998_p11 = scmp.ne.s32.totalorder %s28_s24, %s1997_s4  ;;  %p2003_p13 = scmp.lt.s32.totalorder %s1997_s4, %s1997_s4 }
  0x1d   :  { %p2004_p0 = por %p2003_p13, %p2002_p12 }
  0x1f   :  { %p2005_p1 = pnand %p2004_p0, %p1998_p11 }
  0x21   :  { %2008 = shalt.err (!%p2005_p1)
}
  0x22   :  { %33 = dma.hbm_to_vmem [thread:$0]  %s2335_s1, 256, %s28_s24, [#allocation6], %s2038_s19, %s2038_s19, %s2039_s20  }
  0x23   :  { %2031 = dma.done.wait [#allocation3], 2432  }
  0x24   :  { %2032 = vsyncadd [#allocation3], 4294964864 }
  0x25   :  { %2033 = dma.done.wait [#allocation6], 256  }
  0x26   :  { %2034 = vsyncadd [#allocation6], 4294967040  ;;  %vm68_vm0 = vcmask 130048   ;;  %v42_v0 = vld [vmem:[#allocation2] sm:$0xff]  ;;  %v43_v1 = vld [vmem:[#allocation2 + $0x8] sm:$0xff]  ;;  %s2042_s1 = smov [#allocation7]  }
  0x27   :  { %v40_v2 = vld [vmem:[#allocation5] sm:$0xff]  ;;  %v76_v3 = vand.u32 4294901760, %v42_v0  ;;  %v79_v4 = vand.u32 4294901760, %v43_v1  ;;  %v41_v5 = vld [vmem:[#allocation5 + $0x8] sm:$0xff]  ;;  %v2082_v27 = vld [vmem:[#allocation2 + $0x10] sm:$0xff]  ;;  %s1320_s6 = sshll.u32 %s2042_s1, 4  ;;  %s1321_s6 = int_to_ptr.vmem [resolvable:$true] %s1320_s6 }
  0x28   :  { %v70_v6 = vsel %vm68_vm0, %v40_v2, 0  ;;  %v73_v7 = vsel %vm68_vm0, %v41_v5, 0  ;;  %v2084_v28 = vld [vmem:[#allocation2 + $0x18] sm:$0xff]  ;;  %v584_v32 = vand.u32 4294901760, %v2082_v27  ;;  %v2094_v35 = vld [vmem:[#allocation2 + $0x20] sm:$0xff]  ;;  %v2096_v36 = vld [vmem:[#allocation2 + $0x28] sm:$0xff]  ;;  %p2014_p3 = scmp.lt.s32.totalorder %s1321_s6, %s1321_s6 }
  0x29   :  { %v142_v8 = vand.u32 4294901760, %v70_v6  ;;  %v1717_v9 = vpack.c.bf16 %v79_v4, %v76_v3  ;;  %v152_v10 = vand.u32 4294901760, %v73_v7  ;;  %v164_v11 = vsub.f32 %v42_v0, %v76_v3  ;;  %v2101_v39 = vld [vmem:[#allocation2 + $0x30] sm:$0xff]  ;;  %v2103_v40 = vld [vmem:[#allocation2 + $0x38] sm:$0xff]  ;;  %v2115_v44 = vld [vmem:[#allocation2 + $0x40] sm:$0xff]  ;;  %s2009_s7 = scalar_lea.vmem %s1321_s6, 16 }
  0x2a   :  { %v171_v12 = vsub.f32 %v43_v1, %v79_v4  ;;  %v587_v33 = vand.u32 4294901760, %v2084_v28  ;;  %v590_v37 = vand.u32 4294901760, %v2094_v35  ;;  %v593_v38 = vand.u32 4294901760, %v2096_v36  ;;  %v2117_v45 = vld [vmem:[#allocation2 + $0x48] sm:$0xff]  ;;  %v52_v50 = vld [vmem:[#allocation2 + $0x50] sm:$0xff]  ;;  %v53_v51 = vld [vmem:[#allocation2 + $0x58] sm:$0xff]  ;;  %p2010_p2 = scmp.ne.s32.totalorder %s1321_s6, %s2009_s7 }
  0x2b   :  { %v143_v13 = vsub.f32 %v70_v6, %v142_v8  ;;  %1730 = vmatprep.subr.bf16.mxu0 %v1717_v9  ;;  %1718 = vmatprep.subr.bf16.mxu1 %v1717_v9  ;;  %v153_v14 = vsub.f32 %v73_v7, %v152_v10  ;;  %v165_v15 = vand.u32 4294901760, %v164_v11  ;;  %v596_v42 = vand.u32 4294901760, %v2101_v39  ;;  %v54_v55 = vld [vmem:[#allocation2 + $0x60] sm:$0xff]  ;;  %v55_v56 = vld [vmem:[#allocation2 + $0x68] sm:$0xff]  ;;  %v56_v60 = vld [vmem:[#allocation2 + $0x70] sm:$0xff]  ;;  %s2013_s8 = scalar_lea.vmem %s1321_s6, 32 }
  0x2c   :  { %v172_v16 = vand.u32 4294901760, %v171_v12  ;;  %1732 = vmatpush3.bf16.msra.mxu0 %v1717_v9  ;;  %1720 = vmatpush3.bf16.msra.mxu1 %v1717_v9  ;;  %v1725_v31 = vpack.c.bf16 %v171_v12, %v164_v11  ;;  %v2092_v34 = vpack.c.bf16 %v587_v33, %v584_v32  ;;  %v2110_v41 = vpack.c.bf16 %v593_v38, %v590_v37  ;;  %v57_v61 = vld [vmem:[#allocation2 + $0x78] sm:$0xff]  ;;  %v58_v1 = vld [vmem:[#allocation2 + $0x80] sm:$0xff]  ;;  %v59_v2 = vld [vmem:[#allocation2 + $0x88] sm:$0xff]  ;;  %p2015_p4 = scmp.lt.s32.totalorder %s2013_s8, %s2009_s7 }
  0x2d   :  { %v144_v17 = vand.u32 4294901760, %v143_v13  ;;  %v154_v18 = vand.u32 4294901760, %v153_v14  ;;  %v166_v19 = vsub.f32 %v164_v11, %v165_v15  ;;  %v599_v43 = vand.u32 4294901760, %v2103_v40 }
  0x2e   :  { %v173_v20 = vsub.f32 %v171_v12, %v172_v16  ;;  %v1733_v21 = vpack.c.bf16 %v172_v16, %v165_v15  ;;  %v602_v47 = vand.u32 4294901760, %v2115_v44  ;;  %v605_v48 = vand.u32 4294901760, %v2117_v45  ;;  %p2016_p5 = por %p2015_p4, %p2014_p3 }
  0x2f   :  { %1490 = vmatprep.mubr.f32.mxu0 %v144_v17  ;;  %v145_v22 = vsub.f32 %v143_v13, %v144_v17  ;;  %v155_v23 = vsub.f32 %v153_v14, %v154_v18  ;;  %v167_v24 = vand.u32 4294901760, %v166_v19  ;;  %v2124_v46 = vpack.c.bf16 %v599_v43, %v596_v42 }
  0x30   :  { %1491 = vmatmul.mubr.f32.vlgmr.msra.gmra.mrb[0].mxu0 %v154_v18  ;;  %v174_v25 = vand.u32 4294901760, %v173_v20  ;;  %1734 = vmatprep.subr.bf16.mxu0 %v1733_v21  ;;  %v2136_v49 = vpack.c.bf16 %v605_v48, %v602_v47  ;;  %v608_v52 = vand.u32 4294901760, %v52_v50  ;;  %v611_v53 = vand.u32 4294901760, %v53_v51  ;;  %p2017_p6 = pnand %p2016_p5, %p2010_p2 }
  0x31   :  { %v146_v26 = vand.u32 4294901760, %v145_v22  ;;  %1736 = vmatpush3.bf16.msra.mxu0 %v1733_v21  ;;  %1497 = vmatprep.mubr.f32.mxu0 %v142_v8  ;;  %v156_v29 = vand.u32 4294901760, %v155_v23  ;;  %v614_v57 = vand.u32 4294901760, %v54_v55  ;;  %v617_v58 = vand.u32 4294901760, %v55_v56 }
  0x32   :  { %v1721_v30 = vpack.c.bf16 %v174_v25, %v167_v24  ;;  %1738 = vmatprep.subr.bf16.mxu0 %v1717_v9  ;;  %v2146_v54 = vpack.c.bf16 %v611_v53, %v608_v52  ;;  %v620_v62 = vand.u32 4294901760, %v56_v60  ;;  %v623_v63 = vand.u32 4294901760, %v57_v61 }
  0x33   :  { %1469 = vmatprep.mubr.f32.mxu1 %v146_v26  ;;  %v2152_v59 = vpack.c.bf16 %v617_v58, %v614_v57  ;;  %v626_v3 = vand.u32 4294901760, %v58_v1  ;;  %v629_v4 = vand.u32 4294901760, %v59_v2  ;;  %v686_v6 = vsub.f32 %v2082_v27, %v584_v32 }
  0x34   :  { %1470 = vmatmul.mubr.f32.vlgmr.msra.gmra.mrb[0].mxu1 %v156_v29  ;;  %1722 = vmatprep.subr.bf16.mxu1 %v1721_v30  ;;  %v2158_v0 = vpack.c.bf16 %v623_v63, %v620_v62  ;;  %v693_v7 = vsub.f32 %v2084_v28, %v587_v33  ;;  %v742_v16 = vsub.f32 %v52_v50, %v608_v52  ;;  %vm1309_vm1 = vcmask 130112  }
  0x35   :  { %1724 = vmatpush3.bf16.msra.mxu1 %v1721_v30  ;;  %1476 = vmatprep.mubr.f32.mxu1 %v142_v8  ;;  %v2164_v5 = vpack.c.bf16 %v629_v4, %v626_v3  ;;  %v749_v17 = vsub.f32 %v53_v51, %v611_v53  ;;  %v756_v21 = vsub.f32 %v54_v55, %v614_v57  ;;  %vm1312_vm2 = vcmask 122880  }
  0x36   :  { %1726 = vmatprep.subr.bf16.mxu1 %v1725_v31  ;;  %v743_v18 = vand.u32 4294901760, %v742_v16  ;;  %v763_v22 = vsub.f32 %v55_v56, %v617_v58  ;;  %v770_v32 = vsub.f32 %v56_v60, %v620_v62  ;;  %v777_v50 = vsub.f32 %v57_v61, %v623_v63 }
  0x37   :  { %v750_v19 = vand.u32 4294901760, %v749_v17  ;;  %v757_v26 = vand.u32 4294901760, %v756_v21  ;;  %v784_v58 = vsub.f32 %v58_v1, %v626_v3  ;;  %v2200_v1 = vpack.c.bf16 %v749_v17, %v742_v16 }
  0x38   :  { %1498 = vmatmul.mubr.f32.vlgmr.msra.gmra.mrb[0].mxu0 %v152_v10  ;;  %v744_v20 = vsub.f32 %v742_v16, %v743_v18  ;;  %v764_v27 = vand.u32 4294901760, %v763_v22  ;;  %v771_v53 = vand.u32 4294901760, %v770_v32  ;;  %v778_v55 = vand.u32 4294901760, %v777_v50 }
  0x39   :  { %1740 = vmatpush3.bf16.msra.mxu0 %v1717_v9  ;;  %1504 = vmatprep.mubr.f32.mxu0 %v142_v8  ;;  %v687_v8 = vand.u32 4294901760, %v686_v6  ;;  %v694_v9 = vand.u32 4294901760, %v693_v7  ;;  %v2182_v23 = vpack.c.bf16 %v750_v19, %v743_v18  ;;  %v751_v24 = vsub.f32 %v749_v17, %v750_v19 }
  0x3a   :  { %1742 = vmatprep.subr.bf16.mxu0 %v2092_v34  ;;  %v745_v25 = vand.u32 4294901760, %v744_v20  ;;  %v2184_v29 = vpack.c.bf16 %v764_v27, %v757_v26  ;;  %v758_v30 = vsub.f32 %v756_v21, %v757_v26  ;;  %v772_v57 = vsub.f32 %v770_v32, %v771_v53 }
  0x3b   :  { %v688_v11 = vsub.f32 %v686_v6, %v687_v8  ;;  %v695_v12 = vsub.f32 %v693_v7, %v694_v9  ;;  %v752_v28 = vand.u32 4294901760, %v751_v24  ;;  %v2204_v3 = vpack.c.bf16 %v777_v50, %v770_v32 }
  0x3c   :  { %1477 = vmatmul.mubr.f32.vlgmr.msra.gmra.mrb[0].mxu1 %v152_v10  ;;  %v759_v51 = vand.u32 4294901760, %v758_v30 }
  0x3d   :  { %1728 = vmatpush3.bf16.msra.mxu1 %v1725_v31  ;;  %1483 = vmatprep.mubr.f32.mxu1 %v143_v13  ;;  %v689_v13 = vand.u32 4294901760, %v688_v11  ;;  %v765_v31 = vsub.f32 %v763_v22, %v764_v27  ;;  %v2186_v33 = vpack.c.bf16 %v752_v28, %v745_v25  ;;  %v779_v11 = vsub.f32 %v777_v50, %v778_v55  ;;  %v1330_v28 = vld [vmem:[#allocation2 + $0x90] ss:$0 sm:$0xff] }
  0x3e   :  { %1838 = vmatprep.subr.bf16.mxu1 %v2092_v34  ;;  %v2198_v25 = vpack.c.bf16 %v693_v7, %v686_v6  ;;  %v2216_v6 = vsub.f32 %v2096_v36, %v593_v38  ;;  %v2228_v36 = vsub.f32 %v2103_v40, %v599_v43  ;;  %v2244_v40 = vsub.f32 %v2115_v44, %v602_v47 }
  0x3f   :  { %v766_v52 = vand.u32 4294901760, %v765_v31  ;;  %v780_v18 = vand.u32 4294901760, %v779_v11  ;;  %v2211_v31 = vsub.f32 %v2094_v35, %v590_v37  ;;  %v2249_v43 = vsub.f32 %v2117_v45, %v605_v48 }
  0x40   :  { %1505 = vmatmul.mubr.f32.vlgmr.msra.gmra.mrb[0].mxu0 %v152_v10  ;;  %v2176_v10 = vpack.c.bf16 %v694_v9, %v687_v8  ;;  %v791_v8 = vsub.f32 %v59_v2, %v629_v4  ;;  %v2190_v9 = vpack.c.bf16 %v778_v55, %v771_v53  ;;  %v2202_v2 = vpack.c.bf16 %v763_v22, %v756_v21 }
  0x41   :  { %1744 = vmatpush3.bf16.msra.mxu0 %v2092_v34  ;;  %v2188_v56 = vpack.c.bf16 %v766_v52, %v759_v51  ;;  %v701_v32 = vand.u32 4294901760, %v2211_v31  ;;  %v708_v50 = vand.u32 4294901760, %v2216_v6  ;;  %v2223_v51 = vsub.f32 %v2101_v39, %v596_v42 }
  0x42   :  { %1746 = vmatprep.subr.bf16.mxu0 %v2110_v41  ;;  %v2206_v4 = vpack.c.bf16 %v791_v8, %v784_v58  ;;  %v722_v42 = vand.u32 4294901760, %v2228_v36  ;;  %v736_v45 = vand.u32 4294901760, %v2249_v43 }
  0x43   :  { %v702_v53 = vsub.f32 %v2211_v31, %v701_v32  ;;  %v709_v55 = vsub.f32 %v2216_v6, %v708_v50  ;;  %v1873_v11 = vpack.c.bf16 %v708_v50, %v701_v32 }
  0x44   :  { %1484 = vmatmul.mubr.f32.vlgmr.msra.gmra.mrb[0].mxu1 %v153_v14  ;;  %v696_v14 = vand.u32 4294901760, %v695_v12  ;;  %v773_v12 = vand.u32 4294901760, %v772_v57  ;;  %v715_v57 = vand.u32 4294901760, %v2223_v51  ;;  %v723_v47 = vsub.f32 %v2228_v36, %v722_v42 }
  0x45   :  { %1840 = vmatpush3.bf16.msra.mxu1 %v2092_v34  ;;  %1748 = vmatpush3.bf16.msra.mxu0 %v2110_v41 }
  0x46   :  { %1842 = vmatprep.subr.bf16.mxu1 %v2110_v41  ;;  %1750 = vmatprep.subr.bf16.mxu0 %v2124_v46  ;;  %v2179_v15 = vpack.c.bf16 %v696_v14, %v689_v13  ;;  %v785_v13 = vand.u32 4294901760, %v784_v58  ;;  %v792_v14 = vand.u32 4294901760, %v791_v8  ;;  %v2194_v63 = vpack.c.bf16 %v780_v18, %v773_v12 }
  0x47   :  { %v716_v18 = vsub.f32 %v2223_v51, %v715_v57 }
  0x48   :  { %v2192_v60 = vpack.c.bf16 %v792_v14, %v785_v13  ;;  %v786_v62 = vsub.f32 %v784_v58, %v785_v13  ;;  %v793_v61 = vsub.f32 %v791_v8, %v792_v14  ;;  %v703_v13 = vand.u32 4294901760, %v702_v53 }
  0x49   :  { %1844 = vmatpush3.bf16.msra.mxu1 %v2110_v41  ;;  %1752 = vmatpush3.bf16.msra.mxu0 %v2124_v46  ;;  %v710_v14 = vand.u32 4294901760, %v709_v55 }
  0x4a   :  { %1846 = vmatprep.subr.bf16.mxu1 %v2124_v46  ;;  %1754 = vmatprep.subr.bf16.mxu0 %v2136_v49  ;;  %v787_v19 = vand.u32 4294901760, %v786_v62  ;;  %v794_v20 = vand.u32 4294901760, %v793_v61  ;;  %v729_v62 = vand.u32 4294901760, %v2244_v40 }
  0x4c   :  { %v2196_v24 = vpack.c.bf16 %v794_v20, %v787_v19  ;;  %v1777_v19 = vpack.c.bf16 %v710_v14, %v703_v13  ;;  %v717_v20 = vand.u32 4294901760, %v716_v18 }
  0x4d   :  { %1848 = vmatpush3.bf16.msra.mxu1 %v2124_v46  ;;  %1756 = vmatpush3.bf16.msra.mxu0 %v2136_v49 }
  0x4e   :  { %1850 = vmatprep.subr.bf16.mxu1 %v2136_v49  ;;  %1758 = vmatprep.subr.bf16.mxu0 %v2146_v54 }
  0x51   :  { %1852 = vmatpush3.bf16.msra.mxu1 %v2136_v49  ;;  %1760 = vmatpush3.bf16.msra.mxu0 %v2146_v54 }
  0x52   :  { %1854 = vmatprep.subr.bf16.mxu1 %v2146_v54  ;;  %1762 = vmatprep.subr.bf16.mxu0 %v2152_v59 }
  0x55   :  { %1856 = vmatpush3.bf16.msra.mxu1 %v2146_v54  ;;  %1764 = vmatpush3.bf16.msra.mxu0 %v2152_v59 }
  0x56   :  { %1858 = vmatprep.subr.bf16.mxu1 %v2152_v59  ;;  %1766 = vmatprep.subr.bf16.mxu0 %v2158_v0 }
  0x59   :  { %1860 = vmatpush3.bf16.msra.mxu1 %v2152_v59  ;;  %1768 = vmatpush3.bf16.msra.mxu0 %v2158_v0 }
  0x5a   :  { %1862 = vmatprep.subr.bf16.mxu1 %v2158_v0  ;;  %1770 = vmatprep.subr.bf16.mxu0 %v2164_v5 }
  0x5d   :  { %1864 = vmatpush3.bf16.msra.mxu1 %v2158_v0  ;;  %1772 = vmatpush3.bf16.msra.mxu0 %v2164_v5 }
  0x5e   :  { %1866 = vmatprep.subr.bf16.mxu1 %v2164_v5  ;;  %1774 = vmatprep.subr.bf16.mxu0 %v2179_v15 }
  0x61   :  { %1868 = vmatpush3.bf16.msra.mxu1 %v2164_v5 }
  0x62   :  { %1870 = vmatprep.subr.bf16.mxu1 %v2176_v10 }
 0x113   :  { %v1506_v26 = vpop.f32.mrb[0].mxu0 }
 0x114   :  { %v567_v27 = vpop.f32.mrb[1].mxu0 }
 0x117   :  { %v1485_v30 = vpop.f32.mrb[0].mxu1 }
 0x118   :  { %v1933_v7 = vadd.f32 %v1485_v30, %v1330_v28  ;;  %v321_v16 = vpop.f32.mrb[1].mxu1  ;;  %v737_v30 = vsub.f32 %v2249_v43, %v736_v45 }
 0x119   :  { %v1935_v17 = vadd.f32 %v1330_v28, %v321_v16  ;;  %v730_v28 = vsub.f32 %v2244_v40, %v729_v62  ;;  %v1881_v16 = vpack.c.bf16 %v736_v45, %v729_v62 }
 0x11a   :  { %v1934_v21 = vadd.f32 %v1933_v7, %v1506_v26  ;;  %v1877_v7 = vpack.c.bf16 %v722_v42, %v715_v57 }
 0x11b   :  { %v1936_v22 = vadd.f32 %v1935_v17, %v567_v27  ;;  %v724_v27 = vand.u32 4294901760, %v723_v47  ;;  %v731_v17 = vand.u32 4294901760, %v730_v28 }
 0x11c   :  { %v578_v35 = vmax.f32 %v1934_v21, 0.0  ;;  %v738_v21 = vand.u32 4294901760, %v737_v30 }
 0x11d   :  { %v577_v37 = vmax.f32 %v1936_v22, 0.0 }
 0x11e   :  { %v2230_v38 = vand.u32 4294901760, %v578_v35  ;;  %v1785_v22 = vpack.c.bf16 %v738_v21, %v731_v17 }
 0x11f   :  { %v2232_v52 = vand.u32 4294901760, %v577_v37 }
 0x120   :  { %v2238_v39 = vsub.f32 %v578_v35, %v2230_v38 }
 0x121   :  { %v2252_v58 = vsub.f32 %v577_v37, %v2232_v52 }
 0x122   :  { %v676_v8 = vand.u32 4294901760, %v2238_v39 }
 0x123   :  { %v666_v12 = vand.u32 4294901760, %v2252_v58 }
 0x124   :  { %v677_v44 = vsub.f32 %v2238_v39, %v676_v8 }
 0x125   :  { %1644 = vmatprep.mubr.f32.mxu1 %v666_v12  ;;  %v667_v48 = vsub.f32 %v2252_v58, %v666_v12 }
 0x126   :  { %1645 = vmatmul.mubr.f32.vlgmr.msra.gmra.mrb[2].mxu1 %v676_v8  ;;  %v678_v26 = vand.u32 4294901760, %v677_v44 }
 0x127   :  { %1872 = vmatpush3.bf16.msra.mxu1 %v2176_v10  ;;  %1679 = vmatprep.mubr.f32.mxu1 %v2232_v52  ;;  %v668_v61 = vand.u32 4294901760, %v667_v48  ;;  %v1781_v10 = vpack.c.bf16 %v724_v27, %v717_v20 }
 0x128   :  { %1874 = vmatprep.subr.bf16.mxu1 %v1873_v11 }
 0x129   :  { %1539 = vmatprep.mubr.f32.mxu0 %v668_v61 }
 0x12a   :  { %1540 = vmatmul.mubr.f32.vlgmr.msra.gmra.mrb[2].mxu0 %v678_v26 }
 0x12b   :  { %1776 = vmatpush3.bf16.msra.mxu0 %v2179_v15  ;;  %1876 = vmatpush3.bf16.msra.mxu1 %v1873_v11  ;;  %v1809_v15 = vpack.c.bf16 %v2216_v6, %v2211_v31 }
 0x12c   :  { %1574 = vmatprep.mubr.f32.mxu0 %v2232_v52  ;;  %1778 = vmatprep.subr.bf16.mxu0 %v1777_v19 }
 0x12d   :  { %1878 = vmatprep.subr.bf16.mxu1 %v1877_v7 }
 0x12f   :  { %1780 = vmatpush3.bf16.msra.mxu0 %v1777_v19  ;;  %1880 = vmatpush3.bf16.msra.mxu1 %v1877_v7 }
 0x130   :  { %1782 = vmatprep.subr.bf16.mxu0 %v1781_v10  ;;  %1882 = vmatprep.subr.bf16.mxu1 %v1881_v16 }
 0x133   :  { %1784 = vmatpush3.bf16.msra.mxu0 %v1781_v10  ;;  %1884 = vmatpush3.bf16.msra.mxu1 %v1881_v16 }
 0x134   :  { %1786 = vmatprep.subr.bf16.mxu0 %v1785_v22  ;;  %1886 = vmatprep.subr.bf16.mxu1 %v2182_v23 }
 0x137   :  { %1788 = vmatpush3.bf16.msra.mxu0 %v1785_v22  ;;  %1888 = vmatpush3.bf16.msra.mxu1 %v2182_v23  ;;  %v1817_v23 = vpack.c.bf16 %v2249_v43, %v2244_v40 }
 0x138   :  { %1790 = vmatprep.subr.bf16.mxu0 %v2186_v33  ;;  %1890 = vmatprep.subr.bf16.mxu1 %v2184_v29 }
 0x13b   :  { %1792 = vmatpush3.bf16.msra.mxu0 %v2186_v33  ;;  %1892 = vmatpush3.bf16.msra.mxu1 %v2184_v29 }
 0x13c   :  { %1794 = vmatprep.subr.bf16.mxu0 %v2188_v56  ;;  %1894 = vmatprep.subr.bf16.mxu1 %v2190_v9 }
 0x13f   :  { %1796 = vmatpush3.bf16.msra.mxu0 %v2188_v56  ;;  %1896 = vmatpush3.bf16.msra.mxu1 %v2190_v9 }
 0x140   :  { %1798 = vmatprep.subr.bf16.mxu0 %v2194_v63  ;;  %1898 = vmatprep.subr.bf16.mxu1 %v2192_v60 }
 0x143   :  { %1800 = vmatpush3.bf16.msra.mxu0 %v2194_v63  ;;  %1900 = vmatpush3.bf16.msra.mxu1 %v2192_v60  ;;  %v1332_v60 = vld [vmem:[#allocation2 + $0x92] ss:$0 sm:$0xff] }
 0x144   :  { %1802 = vmatprep.subr.bf16.mxu0 %v2196_v24  ;;  %1902 = vmatprep.subr.bf16.mxu1 %v2092_v34 }
 0x146   :  { %1680 = vmatmul.mubr.f32.vlgmr.msra.gmra.mrb[2].mxu1 %v2230_v38 }
 0x147   :  { %1804 = vmatpush3.bf16.msra.mxu0 %v2196_v24  ;;  %1904 = vmatpush3.bf16.msra.mxu1 %v2092_v34  ;;  %v1813_v34 = vpack.c.bf16 %v2228_v36, %v2223_v51 }
 0x148   :  { %1714 = vmatprep.mubr.f32.mxu1 %v2232_v52  ;;  %1806 = vmatprep.subr.bf16.mxu0 %v2198_v25 }
 0x149   :  { %1906 = vmatprep.subr.bf16.mxu1 %v2110_v41 }
 0x14a   :  { %1575 = vmatmul.mubr.f32.vlgmr.msra.gmra.mrb[2].mxu0 %v2230_v38 }
 0x14b   :  { %1808 = vmatpush3.bf16.msra.mxu0 %v2198_v25  ;;  %1609 = vmatprep.mubr.f32.mxu0 %v2252_v58 }
 0x14c   :  { %1908 = vmatpush3.bf16.msra.mxu1 %v2110_v41  ;;  %1810 = vmatprep.subr.bf16.mxu0 %v1809_v15  ;;  %v63_v41 = vld [vmem:[#allocation2 + $0x93] sm:$0x1] }
 0x14d   :  { %1910 = vmatprep.subr.bf16.mxu1 %v2124_v46 }
 0x14f   :  { %1812 = vmatpush3.bf16.msra.mxu0 %v1809_v15 }
 0x150   :  { %1912 = vmatpush3.bf16.msra.mxu1 %v2124_v46  ;;  %1814 = vmatprep.subr.bf16.mxu0 %v1813_v34  ;;  %v2041_v46 = vmov 0  }
 0x151   :  { %1914 = vmatprep.subr.bf16.mxu1 %v2136_v49  ;;  %1963 = vset.pattern.permute.xlu1 %v2041_v46 }
 0x152   :  { %1964 = vset.pattern.permute.xlu0 %v2041_v46  ;;  %1281 = vperm.xlu1 %1963, %v63_v41  }
 0x153   :  { %1816 = vmatpush3.bf16.msra.mxu0 %v1813_v34 }
 0x154   :  { %1916 = vmatpush3.bf16.msra.mxu1 %v2136_v49  ;;  %1818 = vmatprep.subr.bf16.mxu0 %v1817_v23 }
 0x155   :  { %1918 = vmatprep.subr.bf16.mxu1 %v2146_v54 }
 0x157   :  { %1820 = vmatpush3.bf16.msra.mxu0 %v1817_v23 }
 0x158   :  { %1920 = vmatpush3.bf16.msra.mxu1 %v2146_v54  ;;  %1822 = vmatprep.subr.bf16.mxu0 %v2200_v1 }
 0x159   :  { %1922 = vmatprep.subr.bf16.mxu1 %v2152_v59 }
 0x15b   :  { %1824 = vmatpush3.bf16.msra.mxu0 %v2200_v1 }
 0x15c   :  { %1924 = vmatpush3.bf16.msra.mxu1 %v2152_v59  ;;  %1826 = vmatprep.subr.bf16.mxu0 %v2202_v2  ;;  %v1331_v59 = vld [vmem:[#allocation2 + $0x91] ss:$0 sm:$0xff] }
 0x15d   :  { %1926 = vmatprep.subr.bf16.mxu1 %v2158_v0 }
 0x15f   :  { %1828 = vmatpush3.bf16.msra.mxu0 %v2202_v2  ;;  %v1283_v2 = vlaneseq }
 0x160   :  { %1928 = vmatpush3.bf16.msra.mxu1 %v2158_v0  ;;  %1830 = vmatprep.subr.bf16.mxu0 %v2204_v3 }
 0x161   :  { %1930 = vmatprep.subr.bf16.mxu1 %v2164_v5  ;;  %v1299_v36 = vand.u32 127, %v1283_v2 }
 0x163   :  { %1832 = vmatpush3.bf16.msra.mxu0 %v2204_v3  ;;  %v1284_v3 = vshrl.u32 %v1283_v2, 7  ;;  %v1304_v37 = vadd.s32 4294967288, %v1299_v36 }
 0x164   :  { %1932 = vmatpush3.bf16.msra.mxu1 %v2164_v5  ;;  %1834 = vmatprep.subr.bf16.mxu0 %v2206_v4 }
 0x165   :  { %v1307_v52 = vsub.s32 %v1304_v37, %v1284_v3 }
 0x167   :  { %1715 = vmatmul.mubr.f32.vlgmr.msra.gmra.mrb[2].mxu1 %v2230_v38  ;;  %1836 = vmatpush3.bf16.msra.mxu0 %v2206_v4  ;;  %v1285_v4 = vsub.s32 0, %v1284_v3  ;;  %v1302_v38 = vsub.s32 %v1299_v36, %v1284_v3 }
 0x16a   :  { %1610 = vmatmul.mubr.f32.vlgmr.msra.gmra.mrb[2].mxu0 %v2238_v39 }
 0x1d1   :  { %v1282_v31 = vpop.permute.xlu1 %1281 }
 0x1d2   :  { %v1286_v6 = vrot.slane %v1282_v31, %v1285_v4 }
 0x23a   :  { %v1716_v49 = vpop.f32.mrb[2].mxu1 }
 0x23b   :  { %v1257_v54 = vpop.f32.mrb[3].mxu1 }
 0x23d   :  { %v1611_v0 = vpop.f32.mrb[2].mxu0 }
 0x23e   :  { %v1937_v29 = vadd.f32 %v1611_v0, %v1331_v59  ;;  %v941_v33 = vpop.f32.mrb[3].mxu0 }
 0x23f   :  { %v1939_v5 = vadd.f32 %v1331_v59, %v941_v33 }
 0x240   :  { %v1938_v56 = vadd.f32 %v1937_v29, %v1716_v49 }
 0x241   :  { %v1940_v9 = vadd.f32 %v1939_v5, %v1257_v54 }
 0x242   :  { %v1268_v24 = vmax.f32 %v1938_v56, 0.0 }
 0x243   :  { %v1267_v63 = vmax.f32 %v1940_v9, 0.0 }
 0x244   :  { %v1274_v1 = vmul.f32 %v1332_v60, %v1268_v24 }
 0x245   :  { %v1273_v25 = vmul.f32 %v1332_v60, %v1267_v63 }
 0x247   :  { %1275 = vadd.xlane.f32.xlu0 %v1273_v25 }
 0x24b   :  { %1277 = vadd.xlane.f32.xlu0 %v1274_v1 }
 0x2d4   :  { %v1276_v32 = vpop.xlane.xlu0 %1275 }
 0x2d5   :  { %v1288_v50 = vadd.f32 %v1286_v6, %v1276_v32 }
 0x2d7   :  { %1293 = vperm.xlu1 %1963, %v1288_v50  }
 0x2d8   :  { %v1278_v51 = vpop.xlane.xlu0 %1277 }
 0x2d9   :  { %v1289_v35 = vadd.f32 %v1286_v6, %v1278_v51 }
 0x2db   :  { %1296 = vperm.xlu0 %1964, %v1289_v35  }
 0x356   :  { %v1294_v53 = vpop.permute.xlu1 %1293 }
 0x357   :  { %v1303_v57 = vrot.slane %v1294_v53, %v1302_v38 }
 0x35a   :  { %v1297_v55 = vpop.permute.xlu0 %1296 }
 0x35b   :  { %v1308_v39 = vrot.slane %v1297_v55, %v1307_v52 }
 0x35d   :  { %v1310_v42 = vsel %vm1309_vm1, %v1308_v39, %v1303_v57 }
 0x35e   :  { %1313 = vst.msk [vmem:[#allocation7] sm:$0x1] %vm1312_vm2, %v1310_v42 }
 0x35f   :  { %2020 = shalt.err (!%p2017_p6)
}
 0x360   :  { %s2021_s11 = scalar_lea.hbm %s2336_s2, 16 }
 0x361   :  { %p2022_p7 = scmp.ne.s32.totalorder %s2336_s2, %s2021_s11  ;;  %p2025_p8 = scmp.lt.u32.totalorder %s2021_s11, %s2336_s2 }
 0x363   :  { %p2027_p9 = pnand %p2025_p8, %p2022_p7 }
 0x365   :  { %2030 = shalt.err (!%p2027_p9)
}
 0x366   :  { %1323 = dma.vmem_to_hbm [thread:$0]  %s1321_s6, 16, %s2336_s2, [#allocation4]  }
 0x367   :  { %2035 = dma.done.wait [#allocation4], 16  }
 0x368   :  { %2036 = vsyncadd [#allocation4], 4294967280 }
 0x369   :  { %1327 = vsyncpa [#allocation3], 1 }
 0x36a   :  { %1328 = vsyncpa [#allocation6], 1 }
 0x36b   :  { %1329 = vsyncpa [#allocation4], 1 }

</bundles_post_ra>
